<compile_context>
chip_gen: v7x
topology: tpu7x:2x2x1
jax: 0.10.0
libtpu: 0.0.40
codegen_flags: <defaults>
</compile_context>

<pallas_src>
import jax
import jax.numpy as jnp
from jax.experimental import pallas as pl
from jax.experimental.pallas import tpu as pltpu


# ----------------------------------------------------------------------------
# small helpers
# ----------------------------------------------------------------------------
def _round_up(n, m):
    return ((n + m - 1) // m) * m


def _cdiv(a, b):
    return -(-a // b)


def _vmem_cap_bytes():
    """Physical VMEM of the current TPU generation (conservative fallback)."""
    try:
        return int(pltpu.get_tpu_info().vmem_capacity_bytes)
    except Exception:
        return 64 << 20  # v7x per-TensorCore VMEM (most restrictive)


_BUFFERED_SUPPORT = None


def _probe_single_buffer():
    """One-time capability probe: can grid-invariant operands be single-
    buffered via pipeline_mode=pl.Buffered(1) on this JAX build (and does it
    produce correct results)?  Tiny fixed-size kernel; failures here only
    select the double-buffered fallback."""
    if not hasattr(pl, "Buffered"):
        return False
    try:
        def k(x_ref, w_ref, o_ref):
            o_ref[...] = x_ref[...] + w_ref[...]

        x = jnp.arange(16 * 128, dtype=jnp.float32).reshape(16, 128)
        w = jnp.ones((8, 128), jnp.float32)
        out = pl.pallas_call(
            k,
            out_shape=jax.ShapeDtypeStruct((16, 128), jnp.float32),
            grid=(2,),
            in_specs=[
                pl.BlockSpec((8, 128), lambda i: (i, 0)),
                pl.BlockSpec((8, 128), lambda i: (0, 0),
                             pipeline_mode=pl.Buffered(1)),
            ],
            out_specs=pl.BlockSpec((8, 128), lambda i: (i, 0)),
        )(x, w)
        out = jax.block_until_ready(out)
        return bool(jnp.allclose(out, x + 1.0))
    except Exception:
        return False


def _single_buffer_supported():
    global _BUFFERED_SUPPORT
    if _BUFFERED_SUPPORT is None:
        _BUFFERED_SUPPORT = _probe_single_buffer()
    return _BUFFERED_SUPPORT


# ----------------------------------------------------------------------------
# kernel
# ----------------------------------------------------------------------------
def ff_kernel(x_ref, w1s_ref, b1s_ref, w2_ref, b2_ref, w3_ref, b3_ref, o_ref):
    D = w2_ref.shape[0]                        # padded feature dim (static)
    x = x_ref[...]

    # Fused first stage: one fat MXU pass computes x@W1 and x@Ws together.
    h1s = jnp.dot(x, w1s_ref[...],
                  preferred_element_type=jnp.float32) + b1s_ref[...]
    h = jnp.maximum(h1s[:, :D], 0.0)           # block branch (Linear -> ReLU)
    s = h1s[:, D:]                             # linear shortcut (no ReLU)

    h = jnp.dot(h.astype(w2_ref.dtype), w2_ref[...],
                preferred_element_type=jnp.float32) + b2_ref[...]
    h = jnp.maximum(h, 0.0)
    h = jnp.dot(h.astype(w3_ref.dtype), w3_ref[...],
                preferred_element_type=jnp.float32) + b3_ref[...]
    h = jnp.maximum(h, 0.0)

    o_ref[...] = (h + s).astype(o_ref.dtype)


def _ff_pallas(x_pad, w1s, b1s, w2t, b2, w3t, b3, *, tb, Dp, out_dtype,
               single_buffer, vmem_limit, cost):
    Bp = x_pad.shape[0]
    grid = (Bp // tb,)

    io_spec = pl.BlockSpec((tb, Dp), lambda i: (i, 0))

    def w_spec(shape):
        if single_buffer:
            # Grid-invariant: ONE resident VMEM copy (fetched once per core).
            return pl.BlockSpec(shape, lambda i: (0, 0),
                                pipeline_mode=pl.Buffered(1))
        # TODO(synk): for very large D on v7x (resident weights > ~70% of
        # VMEM) stream W2/W3 per output-feature tile instead of keeping
        # (double-buffered) copies resident.
        return pl.BlockSpec(shape, lambda i: (0, 0))

    def b_spec(shape):                         # biases are tiny; plain spec
        return pl.BlockSpec(shape, lambda i: (0, 0))

    return pl.pallas_call(
        ff_kernel,
        out_shape=jax.ShapeDtypeStruct((Bp, Dp), out_dtype),
        grid=grid,
        in_specs=[
            io_spec,
            w_spec((Dp, 2 * Dp)), b_spec((1, 2 * Dp)),   # fused W1|Ws, b1|bs
            w_spec((Dp, Dp)), b_spec((1, Dp)),           # W2, b2
            w_spec((Dp, Dp)), b_spec((1, Dp)),           # W3, b3
        ],
        out_specs=io_spec,
        compiler_params=pltpu.CompilerParams(
            dimension_semantics=("parallel",),
            vmem_limit_bytes=int(vmem_limit),
        ),
        cost_estimate=cost,
    )(x_pad, w1s, b1s, w2t, b2, w3t, b3)


# ----------------------------------------------------------------------------
# host-side wrappers
# ----------------------------------------------------------------------------
def pack_params(params, *, compute_dtype=None):
    """One-time packing of PyTorch-convention FF params for the kernel.

    Transposes (out,in)->(in,out), pads features to a multiple of 128, fuses
    W1|Ws (they share the same LHS) and b1|bs, and casts weights to the
    compute dtype (default: bfloat16 when params are f32 — MXU-native)."""
    w1 = jnp.asarray(params["w1"])
    D = int(w1.shape[0])
    if compute_dtype is None:
        compute_dtype = jnp.bfloat16 if w1.dtype == jnp.float32 else w1.dtype
    cdt = jnp.dtype(compute_dtype)
    Dp = _round_up(max(D, 128), 128)

    def prep_w(w):   # (out,in) -> (in,out), pad to (Dp,Dp), compute dtype
        wt = jnp.asarray(w).T.astype(cdt)
        return jnp.pad(wt, ((0, Dp - D), (0, Dp - D)))

    def prep_b(b):   # (D,) -> (1,Dp), f32 (bias-add / ReLU stay in f32)
        bb = jnp.asarray(b).reshape(1, D).astype(jnp.float32)
        return jnp.pad(bb, ((0, 0), (0, Dp - D)))

    w1t, w2t, w3t, wst = (prep_w(params[k]) for k in ("w1", "w2", "w3", "ws"))
    b1, b2, b3, bs = (prep_b(params[k]) for k in ("b1", "b2", "b3", "bs"))

    packed = {
        "w1s": jnp.concatenate([w1t, wst], axis=1),   # (Dp, 2Dp)
        "b1s": jnp.concatenate([b1, bs], axis=1),     # (1, 2Dp)
        "w2": w2t, "b2": b2,
        "w3": w3t, "b3": b3,
        "d": D, "dp": Dp, "cdt": cdt,
    }
    # Materialize once so no weight prep leaks into the per-call forward path.
    for k in ("w1s", "b1s", "w2", "b2", "w3", "b3"):
        packed[k] = jax.block_until_ready(packed[k])
    return packed


def _pick_tb(B, sublane):
    """Batch tile: MXU-aligned, >=2 grid steps when B allows (v7x megacore),
    derived from B so padding waste stays bounded."""
    if B >= 512:
        n_steps = max(2, _cdiv(B, 256))
        return _round_up(_cdiv(B, n_steps), 256)
    if B > 2 * sublane:
        return _round_up(_cdiv(B, 2), sublane)       # exactly 2 grid steps
    return _round_up(max(B, 1), sublane)


def ff_forward(x, packed, *, tb=None):
    """x: (B, D).  packed: output of pack_params()."""
    B, D = x.shape
    assert D == packed["d"], "feature dim mismatch with packed params"
    Dp, cdt = packed["dp"], jnp.dtype(packed["cdt"])
    out_dtype = x.dtype
    w_itm = cdt.itemsize
    out_itm = jnp.dtype(out_dtype).itemsize

    sublane = 16 if w_itm < 4 else 8                 # bf16 needs (16,128) tiles
    tb = _pick_tb(B, sublane) if tb is None else _round_up(tb, sublane)
    Bp = _round_up(B, tb)

    single_buffer = _single_buffer_supported()

    # Explicit VMEM budget: resident weights + biases + pipelined x/out +
    # f32 intermediates (h1s: 2Dp, h: Dp, s: Dp), capped to this generation.
    weight_bytes = 4 * Dp * Dp * w_itm * (1 if single_buffer else 2)
    bias_bytes = 2 * (4 * Dp) * 4
    io_bytes = 2 * tb * Dp * w_itm + 2 * tb * Dp * out_itm
    interm_bytes = tb * (4 * Dp) * 4
    needed = weight_bytes + bias_bytes + io_bytes + interm_bytes + (2 << 20)
    cap = (_vmem_cap_bytes() * 7) // 8               # ~87% of physical VMEM
    vmem_limit = max(16 << 20, min(max(needed, 32 << 20), cap))

    cost = pl.CostEstimate(
        flops=2 * 4 * Bp * Dp * Dp,
        transcendentals=0,
        bytes_accessed=int(4 * Dp * Dp * w_itm + Bp * Dp * (w_itm + out_itm)),
    )

    x_pad = x.astype(cdt)
    if Bp != B or Dp != D:
        x_pad = jnp.pad(x_pad, ((0, Bp - B), (0, Dp - D)))

    out = _ff_pallas(x_pad, packed["w1s"], packed["b1s"], packed["w2"],
                     packed["b2"], packed["w3"], packed["b3"],
                     tb=tb, Dp=Dp, out_dtype=out_dtype,
                     single_buffer=single_buffer, vmem_limit=vmem_limit,
                     cost=cost)
    if Bp != B or Dp != D:
        out = out[:B, :D]
    return out


# ----------------------------------------------------------------------------
# reference + init
# ----------------------------------------------------------------------------
def init_params(key, input_dim):
    """Deterministic init mirroring nn.Linear default (uniform +/- 1/sqrt(fan_in))."""
    bound = 1.0 / jnp.sqrt(input_dim)
    keys = jax.random.split(key, 8)

    def u(k, shape):
        return jax.random.uniform(k, shape, jnp.float32, -bound, bound)

    return {
        "w1": u(keys[0], (input_dim, input_dim)), "b1": u(keys[1], (input_dim,)),
        "w2": u(keys[2], (input_dim, input_dim)), "b2": u(keys[3], (input_dim,)),
        "w3": u(keys[4], (input_dim, input_dim)), "b3": u(keys[5], (input_dim,)),
        "ws": u(keys[6], (input_dim, input_dim)), "bs": u(keys[7], (input_dim,)),
    }


def ff_reference(x, p):
    """Pure-JAX reference matching the PyTorch forward."""
    h = jax.nn.relu(x @ p["w1"].T + p["b1"])
    h = jax.nn.relu(h @ p["w2"].T + p["b2"])
    h = jax.nn.relu(h @ p["w3"].T + p["b3"])
    s = x @ p["ws"].T + p["bs"]
    return h + s


if __name__ == "__main__":
    key = jax.random.PRNGKey(0)
    k_x, k_p = jax.random.split(key)

    # Small shapes consistent with the module: batch=8, input_dim=32.
    B, D = 8, 32
    x = jax.random.normal(k_x, (B, D), jnp.float32)
    params = init_params(k_p, D)
    ref = ff_reference(x, params)

    # Exact f32-matmul path: tight correctness check.
    packed_f32 = pack_params(params, compute_dtype=jnp.float32)
    out_f32 = jax.block_until_ready(ff_forward(x, packed_f32))
    assert out_f32.shape == (B, D)
    assert jnp.allclose(out_f32, ref, atol=1e-5, rtol=1e-5), (
        f"f32 max abs err {jnp.max(jnp.abs(out_f32 - ref))}")

    # Default path: bf16 matmuls (MXU-native on v5e/v6e/v7x), f32 accumulate.
    packed = pack_params(params)
    out = jax.block_until_ready(ff_forward(x, packed))
    assert out.shape == (B, D)
    assert jnp.allclose(out, ref, atol=8e-2, rtol=5e-2), (
        f"bf16 max abs err {jnp.max(jnp.abs(out - ref))}")

    print("KERNEL_OK")
</pallas_src>

<mosaic_0001>
module attributes {stable_mosaic.version = 11 : i64} {
  func.func @k(%arg0: i32, %arg1: memref<8x128xf32, #tpu.memory_space<vmem>>, %arg2: memref<8x128xf32, #tpu.memory_space<vmem>>, %arg3: memref<8x128xf32, #tpu.memory_space<vmem>>) attributes {dimension_semantics = [#tpu.dimension_semantics<arbitrary>], iteration_bounds = array<i64: 2>, scalar_prefetch = 0 : i64, scratch_operands = 0 : i64, tpu.core_type = #tpu.core_type<tc>, window_params = [{transform_indices = @transform_0, window_bounds = array<i64: 8, 128>}, {pipeline_mode = #tpu.pipeline_mode<synchronous>, transform_indices = @transform_1, window_bounds = array<i64: 8, 128>}, {transform_indices = @transform_2, window_bounds = array<i64: 8, 128>}]} {
    %c0 = arith.constant 0 : index
    %c0_0 = arith.constant 0 : index
    %0 = vector.load %arg1[%c0, %c0_0] : memref<8x128xf32, #tpu.memory_space<vmem>>, vector<8x128xf32>
    %c0_1 = arith.constant 0 : index
    %c0_2 = arith.constant 0 : index
    %1 = vector.load %arg2[%c0_1, %c0_2] : memref<8x128xf32, #tpu.memory_space<vmem>>, vector<8x128xf32>
    %2 = arith.addf %0, %1 : vector<8x128xf32>
    %c0_3 = arith.constant 0 : index
    %c0_4 = arith.constant 0 : index
    %3 = vector.load %arg3[%c0_3, %c0_4] : memref<8x128xf32, #tpu.memory_space<vmem>>, vector<8x128xf32>
    tpu.vector_store %arg3[%c0_3, %c0_4], %2 {strides = array<i32>} : memref<8x128xf32, #tpu.memory_space<vmem>>, vector<8x128xf32>,
    return
  }
  func.func @transform_0(%arg0: i32) -> (i32, i32) {
    %c0_i32 = arith.constant 0 : i32
    %c0_i32_0 = arith.constant 0 : i32
    return %arg0, %c0_i32 : i32, i32
  }
  func.func @transform_1(%arg0: i32) -> (i32, i32) {
    %c0_i32 = arith.constant 0 : i32
    %c0_i32_0 = arith.constant 0 : i32
    %c0_i32_1 = arith.constant 0 : i32
    return %c0_i32, %c0_i32_0 : i32, i32
  }
  func.func @transform_2(%arg0: i32) -> (i32, i32) {
    %c0_i32 = arith.constant 0 : i32
    %c0_i32_0 = arith.constant 0 : i32
    return %arg0, %c0_i32 : i32, i32
  }
}

module attributes {stable_mosaic.version = 11 : i64} {
  func.func @ff_kernel(%arg0: i32, %arg1: memref<8x128xf32, #tpu.memory_space<vmem>>, %arg2: memref<128x256xf32, #tpu.memory_space<vmem>>, %arg3: memref<1x256xf32, #tpu.memory_space<vmem>>, %arg4: memref<128x128xf32, #tpu.memory_space<vmem>>, %arg5: memref<1x128xf32, #tpu.memory_space<vmem>>, %arg6: memref<128x128xf32, #tpu.memory_space<vmem>>, %arg7: memref<1x128xf32, #tpu.memory_space<vmem>>, %arg8: memref<8x128xf32, #tpu.memory_space<vmem>>) attributes {dimension_semantics = [#tpu.dimension_semantics<parallel>], iteration_bounds = array<i64: 1>, scalar_prefetch = 0 : i64, scratch_operands = 0 : i64, tpu.core_type = #tpu.core_type<tc>, window_params = [{transform_indices = @transform_0, window_bounds = array<i64: 8, 128>}, {pipeline_mode = #tpu.pipeline_mode<synchronous>, transform_indices = @transform_1, window_bounds = array<i64: 128, 256>}, {pipeline_mode = #tpu.pipeline_mode<synchronous>, transform_indices = @transform_2, window_bounds = array<i64: 1, 256>}, {pipeline_mode = #tpu.pipeline_mode<synchronous>, transform_indices = @transform_3, window_bounds = array<i64: 128, 128>}, {pipeline_mode = #tpu.pipeline_mode<synchronous>, transform_indices = @transform_4, window_bounds = array<i64: 1, 128>}, {pipeline_mode = #tpu.pipeline_mode<synchronous>, transform_indices = @transform_5, window_bounds = array<i64: 128, 128>}, {pipeline_mode = #tpu.pipeline_mode<synchronous>, transform_indices = @transform_6, window_bounds = array<i64: 1, 128>}, {transform_indices = @transform_7, window_bounds = array<i64: 8, 128>}]} {
    %c0 = arith.constant 0 : index
    %c0_0 = arith.constant 0 : index
    %0 = vector.load %arg1[%c0, %c0_0] : memref<8x128xf32, #tpu.memory_space<vmem>>, vector<8x128xf32>
    %c0_1 = arith.constant 0 : index
    %c0_2 = arith.constant 0 : index
    %1 = vector.load %arg2[%c0_1, %c0_2] : memref<128x256xf32, #tpu.memory_space<vmem>>, vector<128x256xf32>
    %cst = arith.constant dense<0.000000e+00> : vector<8x256xf32>
    %2 = tpu.matmul %0, %1, %cst {dimension_numbers = #tpu.dot_dimension_numbers<[1], [0], [0], [1], [0, 0, 1, 1], [], []>} : vector<8x128xf32>, vector<128x256xf32>, vector<8x256xf32> -> vector<8x256xf32>
    %c0_3 = arith.constant 0 : index
    %c0_4 = arith.constant 0 : index
    %3 = vector.load %arg3[%c0_3, %c0_4] : memref<1x256xf32, #tpu.memory_space<vmem>>, vector<1x256xf32>
    %4 = vector.broadcast %3 : vector<1x256xf32> to vector<8x256xf32>
    %5 = arith.addf %2, %4 : vector<8x256xf32>
    %6 = vector.extract_strided_slice %5 {offsets = [0, 0], sizes = [8, 128], strides = [1, 1]} : vector<8x256xf32> to vector<8x128xf32>
    %cst_5 = arith.constant 0.000000e+00 : f32
    %7 = vector.broadcast %cst_5 : f32 to vector<8x128xf32>
    %8 = arith.maximumf %6, %7 : vector<8x128xf32>
    %9 = vector.extract_strided_slice %5 {offsets = [0, 128], sizes = [8, 128], strides = [1, 1]} : vector<8x256xf32> to vector<8x128xf32>
    %c0_6 = arith.constant 0 : index
    %c0_7 = arith.constant 0 : index
    %10 = vector.load %arg4[%c0_6, %c0_7] : memref<128x128xf32, #tpu.memory_space<vmem>>, vector<128x128xf32>
    %cst_8 = arith.constant dense<0.000000e+00> : vector<8x128xf32>
    %11 = tpu.matmul %8, %10, %cst_8 {dimension_numbers = #tpu.dot_dimension_numbers<[1], [0], [0], [1], [0, 0, 1, 1], [], []>} : vector<8x128xf32>, vector<128x128xf32>, vector<8x128xf32> -> vector<8x128xf32>
    %c0_9 = arith.constant 0 : index
    %c0_10 = arith.constant 0 : index
    %12 = vector.load %arg5[%c0_9, %c0_10] : memref<1x128xf32, #tpu.memory_space<vmem>>, vector<1x128xf32>
    %13 = vector.broadcast %12 : vector<1x128xf32> to vector<8x128xf32>
    %14 = arith.addf %11, %13 : vector<8x128xf32>
    %cst_11 = arith.constant 0.000000e+00 : f32
    %15 = vector.broadcast %cst_11 : f32 to vector<8x128xf32>
    %16 = arith.maximumf %14, %15 : vector<8x128xf32>
    %c0_12 = arith.constant 0 : index
    %c0_13 = arith.constant 0 : index
    %17 = vector.load %arg6[%c0_12, %c0_13] : memref<128x128xf32, #tpu.memory_space<vmem>>, vector<128x128xf32>
    %cst_14 = arith.constant dense<0.000000e+00> : vector<8x128xf32>
    %18 = tpu.matmul %16, %17, %cst_14 {dimension_numbers = #tpu.dot_dimension_numbers<[1], [0], [0], [1], [0, 0, 1, 1], [], []>} : vector<8x128xf32>, vector<128x128xf32>, vector<8x128xf32> -> vector<8x128xf32>
    %c0_15 = arith.constant 0 : index
    %c0_16 = arith.constant 0 : index
    %19 = vector.load %arg7[%c0_15, %c0_16] : memref<1x128xf32, #tpu.memory_space<vmem>>, vector<1x128xf32>
    %20 = vector.broadcast %19 : vector<1x128xf32> to vector<8x128xf32>
    %21 = arith.addf %18, %20 : vector<8x128xf32>
    %cst_17 = arith.constant 0.000000e+00 : f32
    %22 = vector.broadcast %cst_17 : f32 to vector<8x128xf32>
    %23 = arith.maximumf %21, %22 : vector<8x128xf32>
    %24 = arith.addf %23, %9 : vector<8x128xf32>
    %c0_18 = arith.constant 0 : index
    %c0_19 = arith.constant 0 : index
    %25 = vector.load %arg8[%c0_18, %c0_19] : memref<8x128xf32, #tpu.memory_space<vmem>>, vector<8x128xf32>
    tpu.vector_store %arg8[%c0_18, %c0_19], %24 {strides = array<i32>} : memref<8x128xf32, #tpu.memory_space<vmem>>, vector<8x128xf32>,
    return
  }
  func.func @transform_0(%arg0: i32) -> (i32, i32) {
    %c0_i32 = arith.constant 0 : i32
    %c0_i32_0 = arith.constant 0 : i32
    return %arg0, %c0_i32 : i32, i32
  }
  func.func @transform_1(%arg0: i32) -> (i32, i32) {
    %c0_i32 = arith.constant 0 : i32
    %c0_i32_0 = arith.constant 0 : i32
    %c0_i32_1 = arith.constant 0 : i32
    return %c0_i32, %c0_i32_0 : i32, i32
  }
  func.func @transform_2(%arg0: i32) -> (i32, i32) {
    %c0_i32 = arith.constant 0 : i32
    %c0_i32_0 = arith.constant 0 : i32
    %c0_i32_1 = arith.constant 0 : i32
    return %c0_i32, %c0_i32_0 : i32, i32
  }
  func.func @transform_3(%arg0: i32) -> (i32, i32) {
    %c0_i32 = arith.constant 0 : i32
    %c0_i32_0 = arith.constant 0 : i32
    %c0_i32_1 = arith.constant 0 : i32
    return %c0_i32, %c0_i32_0 : i32, i32
  }
  func.func @transform_4(%arg0: i32) -> (i32, i32) {
    %c0_i32 = arith.constant 0 : i32
    %c0_i32_0 = arith.constant 0 : i32
    %c0_i32_1 = arith.constant 0 : i32
    return %c0_i32, %c0_i32_0 : i32, i32
  }
  func.func @transform_5(%arg0: i32) -> (i32, i32) {
    %c0_i32 = arith.constant 0 : i32
    %c0_i32_0 = arith.constant 0 : i32
    %c0_i32_1 = arith.constant 0 : i32
    return %c0_i32, %c0_i32_0 : i32, i32
  }
  func.func @transform_6(%arg0: i32) -> (i32, i32) {
    %c0_i32 = arith.constant 0 : i32
    %c0_i32_0 = arith.constant 0 : i32
    %c0_i32_1 = arith.constant 0 : i32
    return %c0_i32, %c0_i32_0 : i32, i32
  }
  func.func @transform_7(%arg0: i32) -> (i32, i32) {
    %c0_i32 = arith.constant 0 : i32
    %c0_i32_0 = arith.constant 0 : i32
    return %arg0, %c0_i32 : i32, i32
  }
}

</mosaic_0001>

<bundles_post_ra>
// kernel: tpu_custom_call.1
= control target key start
LH: loop header
LB: loop body
LE: loop exit
PB: predicated region body
PF: predicated region fallthrough
CT: control target
= control target key end

     0   :  { %7 = vsyncpa [#allocation3], 0  ;;  %s690_s0 = inlined_call_operand.hbm [shape: f32[16,128], index: 0, kind: input, shape index: {}]   ;;  %s691_s1 = inlined_call_operand.hbm [shape: f32[8,128], index: 1, kind: input, shape index: {}]   ;;  %s692_s2 = inlined_call_operand.hbm [shape: f32[16,128], index: 2, kind: output, shape index: {}]  }
   0x1   :  { %9 = vsyncpa [#allocation3 + $0x1], 0 }
   0x2   :  { %10 = vsyncpa [#allocation6], 0 }
   0x3   :  { %11 = vsyncpa [#allocation4], 0 }
   0x4   :  { %13 = vsyncpa [#allocation4 + $0x1], 0  ;;  %s489_s9 = smov 0   ;;  %s491_s10 = smov 0  }
   0x5   :  { %s493_s11 = smov 0   ;;  %s495_s12 = smov 0  }
   0x6 LB: > { %s510_s13 = sadd.s32 4294967295, %s469_s12   ;;  %s270_s14 = sadd.s32 4294967294, %s469_s12   ;;  %s469_s12 = sphi %s495_s12, %s716_s12   ;;  %s465_s11 = sphi %s493_s11, %s715_s11   ;;  %s461_s10 = sphi %s491_s10, %s714_s10   ;;  %s457_s9 = sphi %s489_s9, %s713_s9  }
   0x7   : > { %p39_p0 = scmp.ne.s32.totalorder %s461_s10, %s457_s9  ;;  %p693_p1 = scmp.eq.s32.totalorder %s510_s13, 0 }
   0x8   : > { %p90_p3 = scmp.eq.s32.totalorder %s270_s14, 1  ;;  %p271_p5 = scmp.ge.s32.totalorder %s469_s12, 1 }
   0x9   : > { %p519_p4 = por %p693_p1, %p39_p0  ;;  %p97_p7 = scmp.lt.s32.totalorder %s469_s12, 3 }
   0xa   : > { %p524_p6 = por %p90_p3, %p39_p0  ;;  %s471_s18 = smov [#allocation5]  }
   0xb   : > { %s696_s15 = scalar_select %p519_p4, 1, 0 }
   0xc   : > { %s697_s16 = scalar_select %p524_p6, 1, 0 }
   0xd   : > { %p529_p8 = pnand %p271_p5, %p97_p7  ;;  %s110_s19 = sshll.u32 %s471_s18, 4  ;;  %s111_s19 = int_to_ptr.vmem [resolvable:$true] %s110_s19 }
   0xe   : > { %s537_s20 = sadd.s32 1, %s469_s12   ;;  %s26_s24 = sadd.s32 1, %s465_s11 }
   0xf   : > { %s698_s17 = scalar_select %p529_p8, 1, 0 }
  0x10   : > { %p292_p10 = pneg %p529_p8  ;;  %s23_s22 = ssub.s32 %s469_s12, %s537_s20 }
  0x11   : > { %p547_p12 = scmp.eq.s32.totalorder %s23_s22, 0  ;;  %s341_s27 = scalar_lea.hbm %s691_s1, 128 }
  0x12   : > { %p541_p11 = pnand %p292_p10, %p693_p1  ;;  %p342_p0 = scmp.ne.s32.totalorder %s691_s1, %s341_s27 }
  0x13   : > { %s700_s23 = scalar_select %p547_p12, 1, 0 }
  0x14   : > { %p343_p3 = pneg %p541_p11  ;;  %p348_p10 = scmp.lt.u32.totalorder %s341_s27, %s691_s1 }
  0x16   : > { %p344_p5 = pnand %p343_p3, %p342_p0 }
  0x18   : > { %p345_p7 = pneg %p344_p5 }
  0x1a   : > { %p350_p9 = pnand %p348_p10, %p345_p7 }
  0x1c   : > { %353 = shalt.err (!%p350_p9)
}
  0x1d   : > { %s354_s4 = scalar_lea.vmem %s111_s19, 128  ;;  %p362_p6 = scmp.lt.s32.totalorder %s111_s19, %s111_s19 }
  0x1e   : > { %p355_p1 = scmp.ne.s32.totalorder %s111_s19, %s354_s4  ;;  %p363_p4 = scmp.lt.s32.totalorder %s354_s4, %s354_s4 }
  0x20   : > { %p357_p2 = pnand %p355_p1, %p343_p3  ;;  %p364_p8 = por %p363_p4, %p362_p6 }
  0x22   : > { %p358_p13 = pneg %p357_p2 }
  0x24   : > { %p365_p12 = pnand %p364_p8, %p358_p13 }
  0x26   : > { %368 = shalt.err (!%p365_p12)
}
  0x27   : > { %295 = dma.hbm_to_vmem [thread:$0]  (!%p541_p11), %s691_s1, 128, %s111_s19, [#allocation6]  }
  0x28   : > { %p701_p1 = scmp.ne.s32.totalorder %s700_s23, 0  ;;  %p34_p2 = scmp.eq.s32.totalorder %s469_s12, 0 }
  0x29   : > { %p702_p4 = scmp.ne.s32.totalorder %s465_s11, %s461_s10  ;;  %p703_p6 = scmp.eq.s32.totalorder %s510_s13, 1 }
  0x2a   : > { %s573_s7 = scalar_select %p701_p1, %s465_s11, %s26_s24  }
  0x2b   : > { %p581_p8 = por %p703_p6, %p702_p4  ;;  %p305_p9 = scmp.lt.s32.totalorder %s469_s12, 2 }
  0x2c   : > { %s121_s14 = sand.u32 1, %s465_s11   ;;  %p705_p12 = pmov %p702_p4 }
  0x2d   : > { %s274_s18 = sshll.u32 %s121_s14, 3  ;;  %s275_s21 = sshll.u32 %s469_s12, 7 }
  0x2e   : > { %p35_p13 = por %p34_p2, %p705_p12  ;;  %s594_s19 = scalar_lea.hbm %s690_s0, %s275_s21 }
  0x2f   : > { %s125_s23 = scalar_lea.vmem [#allocation2], %s274_s18  ;;  %s122_s27 = scalar_lea.sflag [#allocation3], %s121_s14 }
  0x30   : > { %s132_s24 = sshll.u32 %s125_s23, 4  ;;  %p596_p11 = pnand %p305_p9, %p35_p13  ;;  %s600_s24 = int_to_ptr.vmem [resolvable:$true] %s132_s24 }
  0x31   : > { %s369_s28 = scalar_lea.hbm %s594_s19, 128  ;;  %s374_s3 = scalar_lea.hbm %s690_s0, 256 }
  0x32   : > { %p370_p0 = scmp.ne.s32.totalorder %s594_s19, %s369_s28  ;;  %p371_p3 = pneg %p596_p11 }
  0x33   : > { %p375_p10 = scmp.lt.u32.totalorder %s594_s19, %s690_s0  ;;  %p376_p1 = scmp.lt.u32.totalorder %s374_s3, %s369_s28 }
  0x34   : > { %p372_p5 = pnand %p371_p3, %p370_p0  ;;  %p378_p4 = scmp.lt.u32.totalorder %s369_s28, %s594_s19 }
  0x35   : > { %p377_p2 = por %p376_p1, %p375_p10 }
  0x36   : > { %p373_p7 = pneg %p372_p5 }
  0x37   : > { %p379_p6 = por %p378_p4, %p377_p2 }
  0x39   : > { %p380_p9 = pnand %p379_p6, %p373_p7 }
  0x3b   : > { %383 = shalt.err (!%p380_p9)
}
  0x3c   : > { %s384_s6 = scalar_lea.vmem %s600_s24, 128  ;;  %s472_s14 = smov [#allocation2]  }
  0x3d   : > { %p385_p12 = scmp.ne.s32.totalorder %s600_s24, %s384_s6  ;;  %s389_s18 = sshll.u32 %s472_s14, 4  ;;  %s390_s18 = int_to_ptr.vmem [resolvable:$false] %s389_s18 }
  0x3e   : > { %s391_s21 = scalar_lea.vmem %s390_s18, 256  ;;  %p392_p5 = scmp.lt.s32.totalorder %s600_s24, %s390_s18 }
  0x3f   : > { %p387_p13 = pnand %p385_p12, %p371_p3  ;;  %p393_p10 = scmp.lt.s32.totalorder %s391_s21, %s384_s6 }
  0x41   : > { %p388_p0 = pneg %p387_p13  ;;  %p394_p1 = por %p393_p10, %p392_p5 }
  0x43   : > { %p395_p2 = pnand %p394_p1, %p388_p0 }
  0x45   : > { %398 = shalt.err (!%p395_p2)
}
  0x46   : > { %299 = dma.hbm_to_vmem [thread:$0]  (!%p596_p11), %s594_s19, 128, %s600_s24, %s122_s27  }
  0x47   : > { %p707_p7 = scmp.ne.s32.totalorder %s698_s17, 0 }
  0x48   : > { %s630_s22 = sand.u32 (!%p707_p7), 1, %s461_s10   ;;  %p708_p3 = scmp.ne.s32.totalorder (!%p707_p7), %s696_s15, 0 }
  0x49   : > { %141 = sbr.rel (%p707_p7) target bundleno = 109 (0x6d), region = 28  ;;  %s277_s25 = sshll.u32 (!%p707_p7), %s630_s22, 3 }
  0x4a   : > { %s144_s23 = scalar_lea.sflag (!%p707_p7), [#allocation3], %s630_s22  ;;  %s147_s28 = scalar_lea.vmem (!%p707_p7), [#allocation2], %s277_s25 }
  0x50   : > { %444 = dma.done.wait (%p708_p3), %s144_s23, 128  }
  0x51   : > { %446 = vsyncadd (%p708_p3), %s144_s23, 4294967168  ;;  %p709_p4 = scmp.eq.s32.totalorder %s510_s13, 0 }
  0x53   : > { %448 = dma.done.wait (%p709_p4), [#allocation6], 128   ;;  %p710_p11 = pmov %p709_p4 }
  0x54   : > { %s171_s17 = scalar_lea.vmem [#allocation7], %s277_s25  ;;  %s281_s24 = sshll.u32 %s510_s13, 7  ;;  %v172_v0 = vld [vmem:[%s147_s28] sm:$0xff]  ;;  %v173_v1 = vld [vmem:[#allocation5] sm:$0xff] }
  0x55   : > { %450 = vsyncadd (%p710_p11), [#allocation6], 4294967168  ;;  %s190_s19 = sshll.u32 %s171_s17, 4  ;;  %v174_v2 = vadd.f32 %v173_v1, %v172_v0  ;;  %s648_s27 = scalar_lea.hbm %s692_s2, %s281_s24  ;;  %s643_s19 = int_to_ptr.vmem [resolvable:$true] %s190_s19 }
  0x56   : > { %s177_s29 = scalar_lea.sflag [#allocation4], %s630_s22  ;;  %s399_s30 = scalar_lea.vmem %s643_s19, 128 }
  0x57   : > { %175 = vst [vmem:[%s171_s17] sm:$0xff] %v174_v2  ;;  %p400_p6 = scmp.ne.s32.totalorder %s643_s19, %s399_s30  ;;  %s473_s13 = smov [#allocation7]  }
  0x58   : > { %s403_s3 = sshll.u32 %s473_s13, 4  ;;  %s404_s3 = int_to_ptr.vmem [resolvable:$false] %s403_s3 }
  0x59   : > { %p401_p9 = pnand %p400_p6, %p581_p8  ;;  %s405_s4 = scalar_lea.vmem %s404_s3, 256 }
  0x5a   : > { %p406_p13 = scmp.lt.s32.totalorder %s643_s19, %s404_s3  ;;  %p407_p0 = scmp.lt.s32.totalorder %s405_s4, %s399_s30 }
  0x5b   : > { %p402_p12 = pneg %p401_p9 }
  0x5c   : > { %p408_p5 = por %p407_p0, %p406_p13 }
  0x5e   : > { %p409_p10 = pnand %p408_p5, %p402_p12 }
  0x60   : > { %412 = shalt.err (!%p409_p10)
}
  0x61   : > { %s413_s5 = scalar_lea.hbm %s648_s27, 128  ;;  %s417_s18 = scalar_lea.hbm %s692_s2, 256 }
  0x62   : > { %p414_p1 = scmp.ne.s32.totalorder %s648_s27, %s413_s5  ;;  %p418_p3 = scmp.lt.u32.totalorder %s648_s27, %s692_s2 }
  0x63   : > { %p419_p4 = scmp.lt.u32.totalorder %s417_s18, %s413_s5  ;;  %p421_p6 = scmp.lt.u32.totalorder %s413_s5, %s648_s27 }
  0x64   : > { %p415_p2 = pnand %p414_p1, %p581_p8 }
  0x65   : > { %p420_p11 = por %p419_p4, %p418_p3 }
  0x66   : > { %p416_p7 = pneg %p415_p2 }
  0x67   : > { %p422_p9 = por %p421_p6, %p420_p11 }
  0x69   : > { %p423_p12 = pnand %p422_p9, %p416_p7 }
  0x6b   : > { %426 = shalt.err (!%p423_p12)
}
  0x6c   : > { %290 = dma.vmem_to_hbm [thread:$0]  (%p581_p8), %s643_s19, 128, %s648_s27, %s177_s29  }
  0x6d PF: > { %s202_s25 = sand.u32 1, %s457_s9   ;;  %p711_p13 = scmp.ne.s32.totalorder %s697_s16, 0 }
  0x6e   : > { %p712_p0 = scmp.ge.s32.totalorder %s469_s12, 2  ;;  %s203_s23 = scalar_lea.sflag [#allocation4], %s202_s25 }
  0x70   : > { %p301_p5 = pnand %p712_p0, %p711_p13 }
  0x72   : > { %452 = dma.done.wait (!%p301_p5), %s203_s23, 128  }
  0x73   : > { %454 = vsyncadd (!%p301_p5), %s203_s23, 4294967168  ;;  %p16_p10 = scmp.ge.s32.totalorder %s537_s20, 4   ;;  %s713_s9 = smov %s461_s10 }
  0x74   : > { %s714_s10 = smov %s465_s11  ;;  %s715_s11 = smov %s573_s7 }
  0x75   : > { %s716_s12 = smov %s537_s20  ;;  %18 = sbr.rel (!%p16_p10) target bundleno = 6 (0x6), region = 77 }
  0x7c   :  { %208 = vsyncpa [#allocation3], 1 }
  0x7d   :  { %210 = vsyncpa [#allocation3 + $0x1], 1 }
  0x7e   :  { %211 = vsyncpa [#allocation6], 1 }
  0x7f   :  { %212 = vsyncpa [#allocation4], 1 }
  0x80   :  { %214 = vsyncpa [#allocation4 + $0x1], 1 }

// kernel: tpu_custom_call.1
= control target key start
LH: loop header
LB: loop body
LE: loop exit
PB: predicated region body
PF: predicated region fallthrough
CT: control target
= control target key end

     0   :  { %12 = vsyncpa [#allocation3], 0  ;;  %s860_s0 = inlined_call_operand.hbm [shape: f32[8,128], index: 0, kind: input, shape index: {}]   ;;  %s861_s1 = inlined_call_operand.hbm [shape: f32[128,256], index: 1, kind: input, shape index: {}]   ;;  %s862_s2 = inlined_call_operand.vmem [shape: f32[1,256], index: 2, kind: input, shape index: {}]   ;;  %s863_s3 = inlined_call_operand.hbm [shape: f32[128,128], index: 3, kind: input, shape index: {}]   ;;  %s864_s4 = inlined_call_operand.vmem [shape: f32[1,128], index: 4, kind: input, shape index: {}]   ;;  %s865_s5 = inlined_call_operand.hbm [shape: f32[128,128], index: 5, kind: input, shape index: {}]   ;;  %s866_s6 = inlined_call_operand.vmem [shape: f32[1,128], index: 6, kind: input, shape index: {}]   ;;  %s867_s7 = inlined_call_operand.hbm [shape: f32[8,128], index: 7, kind: output, shape index: {}]  }
   0x1   :  { %13 = vsyncpa [#allocation6], 0 }
   0x2   :  { %14 = vsyncpa [#allocation9], 0 }
   0x3   :  { %15 = vsyncpa [#allocation4], 0  ;;  %s720_s24 = smov [#allocation5]   ;;  %s602_s28 = scalar_lea.hbm %s861_s1, 4096 }
   0x4   :  { %s31_s25 = sshll.u32 %s720_s24, 4  ;;  %p603_p0 = scmp.ne.s32.totalorder %s861_s1, %s602_s28  ;;  %s32_s25 = int_to_ptr.vmem [resolvable:$true] %s31_s25 }
   0x5   :  { %p606_p1 = scmp.lt.u32.totalorder %s602_s28, %s861_s1 }
   0x7   :  { %p608_p2 = pnand %p606_p1, %p603_p0 }
   0x9   :  { %611 = shalt.err (!%p608_p2)
}
   0xa   :  { %s612_s10 = scalar_lea.vmem %s32_s25, 4096  ;;  %p617_p4 = scmp.lt.s32.totalorder %s32_s25, %s32_s25 }
   0xb   :  { %p613_p3 = scmp.ne.s32.totalorder %s32_s25, %s612_s10  ;;  %p618_p5 = scmp.lt.s32.totalorder %s612_s10, %s612_s10 }
   0xd   :  { %p619_p6 = por %p618_p5, %p617_p4 }
   0xf   :  { %p620_p7 = pnand %p619_p6, %p613_p3 }
  0x11   :  { %623 = shalt.err (!%p620_p7)
}
  0x12   :  { %s721_s11 = smov 256   ;;  %s722_s12 = smov 16  }
  0x13   :  { %37 = dma.hbm_to_vmem [thread:$0]  %s861_s1, 4096, %s32_s25, [#allocation6], %s721_s11, %s721_s11, %s722_s12  }
  0x14   :  { %s723_s15 = smov [#allocation2]   ;;  %s724_s17 = smov [#allocation7]  }
  0x15   :  { %s22_s16 = sshll.u32 %s723_s15, 4  ;;  %s45_s18 = sshll.u32 %s724_s17, 4  ;;  %s23_s16 = int_to_ptr.vmem [resolvable:$true] %s22_s16  ;;  %s46_s18 = int_to_ptr.vmem [resolvable:$true] %s45_s18 }
  0x16   :  { %s624_s21 = scalar_lea.hbm %s860_s0, 128 }
  0x17   :  { %p625_p8 = scmp.ne.s32.totalorder %s860_s0, %s624_s21  ;;  %p628_p9 = scmp.lt.u32.totalorder %s624_s21, %s860_s0 }
  0x19   :  { %p630_p10 = pnand %p628_p9, %p625_p8 }
  0x1b   :  { %633 = shalt.err (!%p630_p10)
}
  0x1c   :  { %s634_s1 = scalar_lea.vmem %s23_s16, 128  ;;  %p639_p12 = scmp.lt.s32.totalorder %s23_s16, %s23_s16 }
  0x1d   :  { %p635_p11 = scmp.ne.s32.totalorder %s23_s16, %s634_s1  ;;  %p640_p13 = scmp.lt.s32.totalorder %s634_s1, %s634_s1 }
  0x1f   :  { %p641_p0 = por %p640_p13, %p639_p12 }
  0x21   :  { %p642_p1 = pnand %p641_p0, %p635_p11 }
  0x23   :  { %645 = shalt.err (!%p642_p1)
}
  0x24   :  { %25 = dma.hbm_to_vmem [thread:$0]  %s860_s0, 128, %s23_s16, [#allocation3]  }
  0x25   :  { %s646_s30 = scalar_lea.hbm %s863_s3, 2048 }
  0x26   :  { %p647_p2 = scmp.ne.s32.totalorder %s863_s3, %s646_s30  ;;  %p650_p3 = scmp.lt.u32.totalorder %s646_s30, %s863_s3 }
  0x28   :  { %p652_p4 = pnand %p650_p3, %p647_p2 }
  0x2a   :  { %655 = shalt.err (!%p652_p4)
}
  0x2b   :  { %s656_s12 = scalar_lea.vmem %s46_s18, 2048  ;;  %p661_p6 = scmp.lt.s32.totalorder %s46_s18, %s46_s18 }
  0x2c   :  { %p657_p5 = scmp.ne.s32.totalorder %s46_s18, %s656_s12  ;;  %p662_p7 = scmp.lt.s32.totalorder %s656_s12, %s656_s12 }
  0x2e   :  { %p663_p8 = por %p662_p7, %p661_p6 }
  0x30   :  { %p664_p9 = pnand %p663_p8, %p657_p5 }
  0x32   :  { %667 = shalt.err (!%p664_p9)
}
  0x33   :  { %s725_s0 = smov 128   ;;  %s726_s13 = smov 8  }
  0x34   :  { %51 = dma.hbm_to_vmem [thread:$0]  %s863_s3, 2048, %s46_s18, [#allocation6], %s725_s0, %s725_s0, %s726_s13  }
  0x35   :  { %s727_s16 = smov [#allocation8]   ;;  %s668_s21 = scalar_lea.hbm %s865_s5, 2048 }
  0x36   :  { %s59_s17 = sshll.u32 %s727_s16, 4  ;;  %p669_p10 = scmp.ne.s32.totalorder %s865_s5, %s668_s21  ;;  %s60_s17 = int_to_ptr.vmem [resolvable:$true] %s59_s17 }
  0x37   :  { %p672_p11 = scmp.lt.u32.totalorder %s668_s21, %s865_s5 }
  0x39   :  { %p674_p12 = pnand %p672_p11, %p669_p10 }
  0x3b   :  { %677 = shalt.err (!%p674_p12)
}
  0x3c   :  { %s678_s1 = scalar_lea.vmem %s60_s17, 2048  ;;  %p683_p0 = scmp.lt.s32.totalorder %s60_s17, %s60_s17 }
  0x3d   :  { %p679_p13 = scmp.ne.s32.totalorder %s60_s17, %s678_s1  ;;  %p684_p1 = scmp.lt.s32.totalorder %s678_s1, %s678_s1 }
  0x3f   :  { %p685_p2 = por %p684_p1, %p683_p0 }
  0x41   :  { %p686_p3 = pnand %p685_p2, %p679_p13 }
  0x43   :  { %689 = shalt.err (!%p686_p3)
}
  0x44   :  { %65 = dma.hbm_to_vmem [thread:$0]  %s865_s5, 2048, %s60_s17, [#allocation9], %s725_s0, %s725_s0, %s726_s13  }
  0x45   :  { %712 = dma.done.wait [#allocation3], 128  }
  0x46   :  { %713 = vsyncadd [#allocation3], 4294967168 }
  0x47   :  { %714 = dma.done.wait [#allocation6], 6144  }
  0x48   :  { %715 = vsyncadd [#allocation6], 4294961152 }
  0x49   :  { %716 = dma.done.wait [#allocation9], 2048  }
  0x4a   :  { %717 = vsyncadd [#allocation9], 4294965248  ;;  %v728_v0 = vmov 0.0   ;;  %v729_v1 = vmov 0.0|0.0   ;;  %v82_v2 = vld [vmem:[#allocation5 + $0x8] sm:$0xff]  ;;  %v84_v3 = vld [vmem:[#allocation5 + $0x18] sm:$0xff] }
  0x4b   :  { %189 = vmatprep.mubr.f32.mxu0 %v728_v0  ;;  %542 = vmatprep.subr.bf16.mxu1 %v729_v1  ;;  %v81_v4 = vld [vmem:[#allocation5] sm:$0xff]  ;;  %v510_v5 = vpack.c.bf16 %v84_v3, %v82_v2  ;;  %v83_v6 = vld [vmem:[#allocation5 + $0x10] sm:$0xff]  ;;  %v86_v7 = vld [vmem:[#allocation5 + $0x28] sm:$0xff]  ;;  %vm730_vm0 = vmmov 0   ;;  %s731_s30 = smov [#allocation10]  }
  0x4c   :  { %v88_v8 = vld [vmem:[#allocation5 + $0x38] sm:$0xff]  ;;  %v512_v9 = vpack.c.bf16 %v83_v6, %v81_v4  ;;  %v85_v11 = vld [vmem:[#allocation5 + $0x20] sm:$0xff]  ;;  %v87_v12 = vld [vmem:[#allocation5 + $0x30] sm:$0xff]  ;;  %472 = vmatprep.mubr.msk.f32.mxu1 %vm730_vm0, %v728_v0  ;;  %s393_s8 = sshll.u32 %s731_s30, 4  ;;  %s394_s8 = int_to_ptr.vmem [resolvable:$true] %s393_s8 }
  0x4d   :  { %v514_v10 = vpack.c.bf16 %v88_v8, %v86_v7  ;;  %v90_v13 = vld [vmem:[#allocation5 + $0x48] sm:$0xff]  ;;  %511 = vmatprep.subr.bf16.mxu0 %v510_v5  ;;  %v92_v14 = vld [vmem:[#allocation5 + $0x58] sm:$0xff]  ;;  %v516_v15 = vpack.c.bf16 %v87_v12, %v85_v11  ;;  %v89_v17 = vld [vmem:[#allocation5 + $0x40] sm:$0xff]  ;;  %p695_p5 = scmp.lt.s32.totalorder %s394_s8, %s394_s8 }
  0x4e   :  { %513 = vmatpush1.bf16.msra.mxu0 %v512_v9  ;;  %v518_v16 = vpack.c.bf16 %v92_v14, %v90_v13  ;;  %v91_v18 = vld [vmem:[#allocation5 + $0x50] sm:$0xff]  ;;  %v94_v19 = vld [vmem:[#allocation5 + $0x68] sm:$0xff]  ;;  %v96_v20 = vld [vmem:[#allocation5 + $0x78] sm:$0xff] }
  0x4f   :  { %515 = vmatprep.subr.bf16.mxu0 %v514_v10  ;;  %v520_v21 = vpack.c.bf16 %v91_v18, %v89_v17  ;;  %v522_v22 = vpack.c.bf16 %v96_v20, %v94_v19  ;;  %v93_v23 = vld [vmem:[#allocation5 + $0x60] sm:$0xff]  ;;  %v95_v24 = vld [vmem:[#allocation5 + $0x70] sm:$0xff]  ;;  %v98_v25 = vld [vmem:[#allocation5 + $0x88] sm:$0xff] }
  0x50   :  { %v100_v26 = vld [vmem:[#allocation5 + $0x98] sm:$0xff]  ;;  %v197_v27 = vld [vmem:[#allocation7] sm:$0xff]  ;;  %v198_v28 = vld [vmem:[#allocation7 + $0x8] sm:$0xff]  ;;  %v524_v30 = vpack.c.bf16 %v95_v24, %v93_v23 }
  0x51   :  { %v199_v29 = vld [vmem:[#allocation7 + $0x10] sm:$0xff]  ;;  %v543_v31 = vpack.c.bf16 %v198_v28, %v197_v27  ;;  %v200_v32 = vld [vmem:[#allocation7 + $0x18] sm:$0xff]  ;;  %v526_v33 = vpack.c.bf16 %v100_v26, %v98_v25  ;;  %v97_v34 = vld [vmem:[#allocation5 + $0x80] sm:$0xff] }
  0x52   :  { %517 = vmatpush1.bf16.msra.mxu0 %v516_v15  ;;  %v99_v35 = vld [vmem:[#allocation5 + $0x90] sm:$0xff]  ;;  %v102_v36 = vld [vmem:[#allocation5 + $0xa8] sm:$0xff]  ;;  %v104_v37 = vld [vmem:[#allocation5 + $0xb8] sm:$0xff]  ;;  %v546_v38 = vpack.c.bf16 %v200_v32, %v199_v29 }
  0x53   :  { %519 = vmatprep.subr.bf16.mxu0 %v518_v16  ;;  %544 = vmatpush3.bf16.msra.mxu1 %v543_v31  ;;  %v201_v39 = vld [vmem:[#allocation7 + $0x20] sm:$0xff]  ;;  %v202_v40 = vld [vmem:[#allocation7 + $0x28] sm:$0xff]  ;;  %v528_v41 = vpack.c.bf16 %v99_v35, %v97_v34  ;;  %v530_v42 = vpack.c.bf16 %v104_v37, %v102_v36  ;;  %v103_v44 = vld [vmem:[#allocation5 + $0xb0] sm:$0xff] }
  0x54   :  { %545 = vmatprep.subr.bf16.mxu1 %v729_v1  ;;  %v101_v43 = vld [vmem:[#allocation5 + $0xa0] sm:$0xff]  ;;  %v106_v45 = vld [vmem:[#allocation5 + $0xc8] sm:$0xff]  ;;  %v108_v46 = vld [vmem:[#allocation5 + $0xd8] sm:$0xff]  ;;  %v549_v47 = vpack.c.bf16 %v202_v40, %v201_v39 }
  0x55   :  { %v203_v48 = vld [vmem:[#allocation7 + $0x30] sm:$0xff]  ;;  %v204_v49 = vld [vmem:[#allocation7 + $0x38] sm:$0xff]  ;;  %v532_v50 = vpack.c.bf16 %v103_v44, %v101_v43  ;;  %v534_v51 = vpack.c.bf16 %v108_v46, %v106_v45  ;;  %v105_v52 = vld [vmem:[#allocation5 + $0xc0] sm:$0xff] }
  0x56   :  { %521 = vmatpush1.bf16.msra.mxu0 %v520_v21  ;;  %v107_v53 = vld [vmem:[#allocation5 + $0xd0] sm:$0xff]  ;;  %v110_v54 = vld [vmem:[#allocation5 + $0xe8] sm:$0xff]  ;;  %v112_v55 = vld [vmem:[#allocation5 + $0xf8] sm:$0xff]  ;;  %v552_v56 = vpack.c.bf16 %v204_v49, %v203_v48 }
  0x57   :  { %523 = vmatprep.subr.bf16.mxu0 %v522_v22  ;;  %547 = vmatpush3.bf16.msra.mxu1 %v546_v38  ;;  %v205_v57 = vld [vmem:[#allocation7 + $0x40] sm:$0xff]  ;;  %v206_v58 = vld [vmem:[#allocation7 + $0x48] sm:$0xff]  ;;  %v536_v59 = vpack.c.bf16 %v107_v53, %v105_v52  ;;  %v538_v60 = vpack.c.bf16 %v112_v55, %v110_v54  ;;  %v111_v62 = vld [vmem:[#allocation5 + $0xf0] sm:$0xff] }
  0x58   :  { %548 = vmatprep.subr.bf16.mxu1 %v729_v1  ;;  %v109_v61 = vld [vmem:[#allocation5 + $0xe0] sm:$0xff]  ;;  %v555_v63 = vpack.c.bf16 %v206_v58, %v205_v57  ;;  %v207_v2 = vld [vmem:[#allocation7 + $0x50] sm:$0xff]  ;;  %v208_v3 = vld [vmem:[#allocation7 + $0x58] sm:$0xff] }
  0x59   :  { %v540_v4 = vpack.c.bf16 %v111_v62, %v109_v61  ;;  %v558_v5 = vpack.c.bf16 %v208_v3, %v207_v2  ;;  %v209_v6 = vld [vmem:[#allocation7 + $0x60] sm:$0xff]  ;;  %v210_v7 = vld [vmem:[#allocation7 + $0x68] sm:$0xff]  ;;  %v80_v8 = vld [vmem:[#allocation2] sm:$0xff] }
  0x5a   :  { %525 = vmatpush1.bf16.msra.mxu0 %v524_v30  ;;  %v561_v9 = vpack.c.bf16 %v210_v7, %v209_v6  ;;  %v211_v10 = vld [vmem:[#allocation7 + $0x70] sm:$0xff]  ;;  %v212_v11 = vld [vmem:[#allocation7 + $0x78] sm:$0xff]  ;;  %v291_v13 = vld [vmem:[#allocation8] sm:$0xff] }
  0x5b   :  { %527 = vmatprep.subr.bf16.mxu0 %v526_v33  ;;  %550 = vmatpush3.bf16.msra.mxu1 %v549_v47  ;;  %v564_v12 = vpack.c.bf16 %v212_v11, %v211_v10  ;;  %v292_v14 = vld [vmem:[#allocation8 + $0x8] sm:$0xff]  ;;  %v293_v15 = vld [vmem:[#allocation8 + $0x10] sm:$0xff]  ;;  %v294_v17 = vld [vmem:[#allocation8 + $0x18] sm:$0xff]  ;;  %v115_v33 = vlaneseq }
  0x5c   :  { %551 = vmatprep.subr.bf16.mxu1 %v729_v1  ;;  %v567_v16 = vpack.c.bf16 %v292_v14, %v291_v13  ;;  %v570_v18 = vpack.c.bf16 %v294_v17, %v293_v15  ;;  %v295_v19 = vld [vmem:[#allocation8 + $0x20] sm:$0xff]  ;;  %v296_v20 = vld [vmem:[#allocation8 + $0x28] sm:$0xff]  ;;  %v297_v22 = vld [vmem:[#allocation8 + $0x30] sm:$0xff] }
  0x5d   :  { %v573_v21 = vpack.c.bf16 %v296_v20, %v295_v19  ;;  %v298_v23 = vld [vmem:[#allocation8 + $0x38] sm:$0xff]  ;;  %v300_v25 = vld [vmem:[#allocation8 + $0x48] sm:$0xff]  ;;  %v301_v27 = vld [vmem:[#allocation8 + $0x50] sm:$0xff]  ;;  %v116_v34 = vshrl.u32 %v115_v33, 7 }
  0x5e   :  { %529 = vmatpush1.bf16.msra.mxu0 %v528_v41  ;;  %v576_v24 = vpack.c.bf16 %v298_v23, %v297_v22  ;;  %v302_v28 = vld [vmem:[#allocation8 + $0x58] sm:$0xff]  ;;  %v303_v30 = vld [vmem:[#allocation8 + $0x60] sm:$0xff]  ;;  %v304_v31 = vld [vmem:[#allocation8 + $0x68] sm:$0xff] }
  0x5f   :  { %531 = vmatprep.subr.bf16.mxu0 %v530_v42  ;;  %553 = vmatpush3.bf16.msra.mxu1 %v552_v56  ;;  %v582_v29 = vpack.c.bf16 %v302_v28, %v301_v27  ;;  %v585_v32 = vpack.c.bf16 %v304_v31, %v303_v30  ;;  %v117_v35 = vsub.s32 0, %v116_v34  ;;  %v113_v36 = vld [vmem:[%s862_s2] sm:$0x3]  ;;  %v305_v42 = vld [vmem:[#allocation8 + $0x70] sm:$0xff]  ;;  %v121_v49 = vsub.s32 1, %v116_v34 }
  0x60   :  { %554 = vmatprep.subr.bf16.mxu1 %v729_v1  ;;  %v306_v43 = vld [vmem:[#allocation8 + $0x78] sm:$0xff] }
  0x61   :  { %v118_v37 = vrot.slane %v113_v36, %v117_v35  ;;  %v588_v44 = vpack.c.bf16 %v306_v43, %v305_v42 }
  0x62   :  { %533 = vmatpush1.bf16.msra.mxu0 %v532_v50  ;;  %v405_v50 = vld [vmem:[%s866_s6] ss:$0 sm:$0xff] }
  0x63   :  { %535 = vmatprep.subr.bf16.mxu0 %v534_v51  ;;  %556 = vmatpush3.bf16.msra.mxu1 %v555_v63  ;;  %v122_v51 = vrot.slane %v113_v36, %v121_v49 }
  0x64   :  { %557 = vmatprep.subr.bf16.mxu1 %v729_v1 }
  0x66   :  { %537 = vmatpush1.bf16.msra.mxu0 %v536_v59 }
  0x67   :  { %539 = vmatprep.subr.bf16.mxu0 %v538_v60  ;;  %559 = vmatpush3.bf16.msra.mxu1 %v558_v5 }
  0x68   :  { %560 = vmatprep.subr.bf16.mxu1 %v729_v1 }
  0x6a   :  { %541 = vmatpush1.bf16.msra.mxu0 %v540_v4 }
  0x6b   :  { %566 = vmatprep.subr.bf16.mxu0 %v729_v1  ;;  %562 = vmatpush3.bf16.msra.mxu1 %v561_v9 }
  0x6c   :  { %563 = vmatprep.subr.bf16.mxu1 %v729_v1 }
  0x6d   :  { %190 = vmatmul.mubr.f32.vlgmr.msra.gmra.mrb[0].mxu0 %v80_v8 }
  0x6e   :  { %507 = vmatprep.mubr.msk.f32.mxu0 %vm730_vm0, %v728_v0  ;;  %568 = vmatpush3.bf16.msra.mxu0 %v567_v16  ;;  %v299_v0 = vld [vmem:[#allocation8 + $0x40] sm:$0xff] }
  0x6f   :  { %565 = vmatpush3.bf16.msra.mxu1 %v564_v12  ;;  %569 = vmatprep.subr.bf16.mxu0 %v729_v1  ;;  %v579_v26 = vpack.c.bf16 %v300_v25, %v299_v0 }
  0x72   :  { %571 = vmatpush3.bf16.msra.mxu0 %v570_v18 }
  0x73   :  { %572 = vmatprep.subr.bf16.mxu0 %v729_v1 }
  0x76   :  { %574 = vmatpush3.bf16.msra.mxu0 %v573_v21 }
  0x77   :  { %575 = vmatprep.subr.bf16.mxu0 %v729_v1 }
  0x7a   :  { %577 = vmatpush3.bf16.msra.mxu0 %v576_v24 }
  0x7b   :  { %578 = vmatprep.subr.bf16.mxu0 %v729_v1 }
  0x7e   :  { %580 = vmatpush3.bf16.msra.mxu0 %v579_v26 }
  0x7f   :  { %581 = vmatprep.subr.bf16.mxu0 %v729_v1 }
  0x82   :  { %583 = vmatpush3.bf16.msra.mxu0 %v582_v29 }
  0x83   :  { %584 = vmatprep.subr.bf16.mxu0 %v729_v1 }
  0x86   :  { %586 = vmatpush3.bf16.msra.mxu0 %v585_v32 }
  0x87   :  { %587 = vmatprep.subr.bf16.mxu0 %v729_v1  ;;  %v404_v1 = vld [vmem:[%s864_s4] ss:$0 sm:$0xff]  ;;  %s690_s4 = scalar_lea.vmem %s394_s8, 128 }
  0x88   :  { %p691_p4 = scmp.ne.s32.totalorder %s394_s8, %s690_s4  ;;  %p696_p6 = scmp.lt.s32.totalorder %s690_s4, %s690_s4 }
  0x8a   :  { %589 = vmatpush3.bf16.msra.mxu0 %v588_v44  ;;  %p697_p7 = por %p696_p6, %p695_p5 }
  0x8c   :  { %p698_p8 = pnand %p697_p7, %p691_p4 }
 0x140   :  { %v191_v38 = vpop.f32.mrb[0].mxu0 }
 0x141   :  { %v192_v39 = vadd.f32 %v191_v38, %v118_v37  ;;  %v193_v40 = vpop.f32.mrb[1].mxu0 }
 0x142   :  { %v194_v55 = vadd.f32 %v193_v40, %v122_v51 }
 0x143   :  { %v196_v41 = vmax.f32 %v192_v39, 0.0 }
 0x145   :  { %473 = vmatmul.mubr.f32.vlgmr.msra.gmra.mrb[0].mxu1 %v196_v41 }
 0x218   :  { %v286_v45 = vpop.f32.mrb[0].mxu1 }
 0x219   :  { %v287_v46 = vadd.f32 %v404_v1, %v286_v45  ;;  %v474_v47 = vpop.f32.mrb[1].mxu1 }
 0x21b   :  { %v290_v48 = vmax.f32 %v287_v46, 0.0 }
 0x21d   :  { %508 = vmatmul.mubr.f32.vlgmr.msra.gmra.mrb[2].mxu0 %v290_v48 }
 0x2f0   :  { %v380_v52 = vpop.f32.mrb[2].mxu0 }
 0x2f1   :  { %v381_v53 = vadd.f32 %v405_v50, %v380_v52  ;;  %v509_v54 = vpop.f32.mrb[3].mxu0 }
 0x2f3   :  { %v384_v56 = vmax.f32 %v381_v53, 0.0 }
 0x2f5   :  { %v385_v57 = vadd.f32 %v384_v56, %v194_v55 }
 0x2f7   :  { %386 = vst [vmem:[#allocation10] sm:$0xff] %v385_v57 }
 0x2f8   :  { %701 = shalt.err (!%p698_p8)
}
 0x2f9   :  { %s702_s10 = scalar_lea.hbm %s867_s7, 128 }
 0x2fa   :  { %p703_p9 = scmp.ne.s32.totalorder %s867_s7, %s702_s10  ;;  %p706_p10 = scmp.lt.u32.totalorder %s702_s10, %s867_s7 }
 0x2fc   :  { %p708_p11 = pnand %p706_p10, %p703_p9 }
 0x2fe   :  { %711 = shalt.err (!%p708_p11)
}
 0x2ff   :  { %396 = dma.vmem_to_hbm [thread:$0]  %s394_s8, 128, %s867_s7, [#allocation4]  }
 0x300   :  { %718 = dma.done.wait [#allocation4], 128  }
 0x301   :  { %719 = vsyncadd [#allocation4], 4294967168 }
 0x302   :  { %400 = vsyncpa [#allocation3], 1 }
 0x303   :  { %401 = vsyncpa [#allocation6], 1 }
 0x304   :  { %402 = vsyncpa [#allocation9], 1 }
 0x305   :  { %403 = vsyncpa [#allocation4], 1 }

</bundles_post_ra>
